<compile_context>
chip_gen: v7x
topology: tpu7x:2x2x1
jax: 0.10.0
libtpu: 0.0.40
codegen_flags: <defaults>
</compile_context>

<pallas_src>
import functools

import jax
import jax.numpy as jnp
from jax.experimental import pallas as pl
from jax.experimental.pallas import tpu as pltpu


# ----------------------------- helpers --------------------------------------

def _round_up(x, m):
    return (x + m - 1) // m * m


def _prep(x, rows, cols, dtype):
    """Cast first, pad second (one fused HBM pass; none when already aligned)."""
    x = x.astype(dtype)
    if x.shape == (rows, cols):
        return x
    return jnp.pad(x, ((0, rows - x.shape[0]), (0, cols - x.shape[1])))


def _prep_bias(b, width):
    b = b.astype(jnp.float32)
    if b.shape[0] != width:
        b = jnp.pad(b, (0, width - b.shape[0]))
    return b.reshape(1, width)


def _scoped_vmem_bytes():
    """Generation-aware scoped-VMEM limit: ~half of physical, clamped 32..64 MiB.

    -> 64 MiB on v5e/v6e (128 MiB physical), 32 MiB on v7x (64 MiB physical).
    """
    phys = 128 * 1024 * 1024
    try:
        phys = int(pltpu.get_tpu_info().vmem_capacity_bytes)
    except Exception:
        pass
    return max(32 * 1024 * 1024, min(64 * 1024 * 1024, phys // 2))


def _fused_fits(n_pad, c_in_p, c_hid_p, c_out_p, budget):
    """Both layers resident in one kernel?  (toy / small graphs)"""
    if n_pad > 1024:
        return False
    est = 2 * 2 * (n_pad * n_pad + n_pad * c_in_p
                   + c_in_p * c_hid_p + c_hid_p * c_out_p)      # bf16 ins, 2x buffered
    est += 2 * n_pad * c_out_p * 4                              # f32 out, 2x buffered
    est += 2 * n_pad * (c_in_p + c_hid_p + c_out_p) * 4         # f32 intermediates
    return est <= (budget * 3) // 4


def _plan_tiles(n_pad, x_width, out_pad, out_itemsize, w_bytes, budget):
    """Pick (tm, tk, x_resident) for one layer under a VMEM byte budget.

    Preference order (per the perf review):
      1. X (or X@W^T) fully resident in VMEM -> loaded from HBM exactly once.
      2. tk == n_pad: one (tm, n_pad) A slab per row tile -> K loop collapses.
      3. tm as large as possible, but an even number (>=2) of row tiles when
         n_pad >= 256 so the "parallel" axis splits across both v7x cores.
    """
    plan_budget = int(budget * 0.85)          # headroom for compiler scratch
    bias_bytes = 2 * 8 * out_pad * 4          # (1, out_pad) f32, double-buffered
    x_full = n_pad * x_width * 2              # bf16

    tms = []
    if n_pad < 256:
        tms.append(n_pad)                     # single row tile is fine for tiny graphs
    r = 2
    while n_pad // r >= 128:
        tm = n_pad // r
        if n_pad % r == 0 and tm % 8 == 0:
            tms.append(tm)
        r *= 2
    if not tms:
        tms.append(n_pad)

    tks = [n_pad]                             # prefer a full-K A slab
    t = n_pad // 2
    while t >= 128:
        if n_pad % t == 0 and t % 128 == 0:
            tks.append(t)
        t //= 2

    def fits(tm, tk, x_res):
        a_buf = 2 * tm * tk * 2                                 # A bf16, 2x buffered
        x_buf = 2 * x_full if x_res else 2 * tk * x_width * 2   # 2x buffered
        acc_buf = tm * x_width * 4                              # f32 accumulator
        out_buf = 2 * tm * out_pad * out_itemsize               # 2x buffered
        return (a_buf + x_buf + acc_buf + out_buf + bias_bytes + w_bytes
                <= plan_budget)

    for x_res in (True, False):
        if x_res and 2 * x_full > plan_budget // 2:
            continue                          # resident X would starve the A slabs
        for tk in tks:
            for tm in tms:
                if fits(tm, tk, x_res):
                    return tm, tk, x_res
    return tms[-1], tks[-1], False            # fallback: smallest tiles, streamed X


# ----------------------------- kernels ---------------------------------------

def _layer_kernel_epi_w(a_ref, x_ref, wt_ref, b_ref, o_ref, acc_ref, *,
                        apply_relu, slice_x, tk):
    """acc += A_tile @ X_tile over K; epilogue (last K): acc @ W^T + b (+relu)."""
    k = pl.program_id(1)

    @pl.when(k == 0)
    def _init():
        acc_ref[...] = jnp.zeros_like(acc_ref)

    if slice_x:   # X fully resident in VMEM; take the current K slice in-kernel.
        x_blk = x_ref[pl.ds(pl.multiple_of(k * tk, 128), tk), :]
    else:
        x_blk = x_ref[...]
    acc_ref[...] += jnp.dot(a_ref[...], x_blk, preferred_element_type=jnp.float32)

    @pl.when(k == pl.num_programs(1) - 1)
    def _fin():
        out = jnp.dot(acc_ref[...].astype(wt_ref.dtype), wt_ref[...],
                      preferred_element_type=jnp.float32) + b_ref[...]
        if apply_relu:
            out = jnp.maximum(out, 0.0)
        # Padded rows hold relu(b)/b; harmless (A's padded columns are zero and
        # padded output rows are sliced off outside the kernel).
        o_ref[...] = out.astype(o_ref.dtype)


def _layer_kernel_pre_w(a_ref, xw_ref, b_ref, o_ref, acc_ref, *,
                        apply_relu, slice_x, tk):
    """Linear hoisted out of the loop: acc += A_tile @ (X@W^T)_tile; epilogue: +b."""
    k = pl.program_id(1)

    @pl.when(k == 0)
    def _init():
        acc_ref[...] = jnp.zeros_like(acc_ref)

    if slice_x:
        xw_blk = xw_ref[pl.ds(pl.multiple_of(k * tk, 128), tk), :]
    else:
        xw_blk = xw_ref[...]
    acc_ref[...] += jnp.dot(a_ref[...], xw_blk, preferred_element_type=jnp.float32)

    @pl.when(k == pl.num_programs(1) - 1)
    def _fin():
        out = acc_ref[...] + b_ref[...]
        if apply_relu:
            out = jnp.maximum(out, 0.0)
        o_ref[...] = out.astype(o_ref.dtype)


def _gcn_fused_kernel(a_ref, x_ref, w1t_ref, b1_ref, w2t_ref, b2_ref, o_ref):
    """Both GCN layers in one resident kernel (small graphs)."""
    a = a_ref[...]
    ax = jnp.dot(a, x_ref[...], preferred_element_type=jnp.float32)
    h = jnp.dot(ax.astype(jnp.bfloat16), w1t_ref[...],
                preferred_element_type=jnp.float32) + b1_ref[...]
    # Padded rows of H hold relu(b1); harmless, see module NOTE.
    h = jnp.maximum(h, 0.0).astype(jnp.bfloat16)
    ah = jnp.dot(a, h, preferred_element_type=jnp.float32)
    out = jnp.dot(ah.astype(jnp.bfloat16), w2t_ref[...],
                  preferred_element_type=jnp.float32) + b2_ref[...]
    o_ref[...] = out.astype(o_ref.dtype)


# ----------------------------- layer drivers ---------------------------------

def _gcn_fused(a_p, x_p, w1t, b1_p, w2t, b2_p, *, vmem_limit):
    n_pad = a_p.shape[0]
    c_in_p, c_hid_p, c_out_p = x_p.shape[1], w1t.shape[1], w2t.shape[1]

    flops = (2 * n_pad * n_pad * (c_in_p + c_hid_p)
             + 2 * n_pad * (c_in_p * c_hid_p + c_hid_p * c_out_p))
    bytes_accessed = (2 * (n_pad * n_pad + n_pad * c_in_p
                           + c_in_p * c_hid_p + c_hid_p * c_out_p)
                      + 4 * (c_hid_p + c_out_p) + 4 * n_pad * c_out_p)

    return pl.pallas_call(
        _gcn_fused_kernel,
        out_shape=jax.ShapeDtypeStruct((n_pad, c_out_p), jnp.float32),
        grid_spec=pltpu.PrefetchScalarGridSpec(
            num_scalar_prefetch=0,
            grid=(1,),
            in_specs=[
                pl.BlockSpec((n_pad, n_pad), lambda i: (0, 0)),     # A
                pl.BlockSpec((n_pad, c_in_p), lambda i: (0, 0)),    # X
                pl.BlockSpec((c_in_p, c_hid_p), lambda i: (0, 0)),  # W1^T
                pl.BlockSpec((1, c_hid_p), lambda i: (0, 0)),       # b1
                pl.BlockSpec((c_hid_p, c_out_p), lambda i: (0, 0)), # W2^T
                pl.BlockSpec((1, c_out_p), lambda i: (0, 0)),       # b2
            ],
            out_specs=pl.BlockSpec((n_pad, c_out_p), lambda i: (0, 0)),
        ),
        compiler_params=pltpu.CompilerParams(
            dimension_semantics=("arbitrary",),
            vmem_limit_bytes=vmem_limit,
        ),
        cost_estimate=pl.CostEstimate(flops=int(flops), transcendentals=0,
                                      bytes_accessed=int(bytes_accessed)),
    )(a_p, x_p, w1t, b1_p, w2t, b2_p)


def _gcn_layer(a_p, x_p, wt_p, b_p, *, apply_relu, out_dtype, budget):
    n_pad = a_p.shape[0]
    in_pad = x_p.shape[1]
    out_pad = wt_p.shape[1]
    hoist = out_pad < in_pad

    if hoist:
        # Hoist X @ W^T out of the grid loop: computed ONCE (not per row tile),
        # and the kernel contracts A against the narrower output width.
        x_in = jnp.dot(x_p, wt_p, preferred_element_type=jnp.float32).astype(x_p.dtype)
        x_width = out_pad
        w_bytes = 0
    else:
        x_in = x_p
        x_width = in_pad
        w_bytes = 2 * in_pad * out_pad * 2        # resident W^T (2x buffered, bf16)

    out_isz = jnp.dtype(out_dtype).itemsize
    tm, tk, x_res = _plan_tiles(n_pad, x_width, out_pad, out_isz, w_bytes, budget)
    grid = (n_pad // tm, n_pad // tk)
    slice_x = bool(x_res and tk < n_pad)

    flops = 2 * n_pad * n_pad * x_width + (0 if hoist else 2 * n_pad * in_pad * out_pad)
    x_reads = 1 if (x_res or grid[0] == 1) else grid[0]
    bytes_accessed = (n_pad * n_pad * 2                         # A read once
                      + n_pad * x_width * 2 * x_reads           # X / XW
                      + (0 if hoist else in_pad * out_pad * 2)  # W^T
                      + out_pad * 4                             # bias
                      + n_pad * out_pad * out_isz)              # output

    a_spec = pl.BlockSpec((tm, tk), lambda i, k: (i, k))
    if x_res:
        x_spec = pl.BlockSpec((n_pad, x_width), lambda i, k: (0, 0))   # resident, 1 DMA
    else:
        x_spec = pl.BlockSpec((tk, x_width), lambda i, k: (k, 0))
    b_spec = pl.BlockSpec((1, out_pad), lambda i, k: (0, 0))
    o_spec = pl.BlockSpec((tm, out_pad), lambda i, k: (i, 0))

    if hoist:
        kernel = functools.partial(_layer_kernel_pre_w, apply_relu=apply_relu,
                                   slice_x=slice_x, tk=tk)
        in_specs = [a_spec, x_spec, b_spec]
        args = (a_p, x_in, b_p)
    else:
        kernel = functools.partial(_layer_kernel_epi_w, apply_relu=apply_relu,
                                   slice_x=slice_x, tk=tk)
        wt_spec = pl.BlockSpec((in_pad, out_pad), lambda i, k: (0, 0))
        in_specs = [a_spec, x_spec, wt_spec, b_spec]
        args = (a_p, x_in, wt_p, b_p)

    return pl.pallas_call(
        kernel,
        out_shape=jax.ShapeDtypeStruct((n_pad, out_pad), out_dtype),
        grid_spec=pltpu.PrefetchScalarGridSpec(
            num_scalar_prefetch=0,
            grid=grid,
            in_specs=in_specs,
            out_specs=o_spec,
            scratch_shapes=[pltpu.VMEM((tm, x_width), jnp.float32)],
        ),
        compiler_params=pltpu.CompilerParams(
            dimension_semantics=("parallel", "arbitrary"),
            vmem_limit_bytes=budget,
        ),
        cost_estimate=pl.CostEstimate(flops=int(flops), transcendentals=0,
                                      bytes_accessed=int(bytes_accessed)),
    )(*args)


# ----------------------------- wrapper ----------------------------------------

def gcn_forward(A, X, W1, b1, W2, b2, use_fused=None):
    """Two-layer GCN forward.

    A : [N, N] float32 adjacency
    X : [N, C_in] float32 node features
    W1: [C_hid, C_in], b1: [C_hid]   (PyTorch nn.Linear layout)
    W2: [C_out, C_hid], b2: [C_out]
    returns [N, C_out] float32
    """
    n = A.shape[0]
    c_in, c_hid, c_out = X.shape[1], W1.shape[0], W2.shape[0]

    n_pad = _round_up(n, 128)
    c_in_p, c_hid_p, c_out_p = (_round_up(c, 128) for c in (c_in, c_hid, c_out))
    bf = jnp.bfloat16

    # Cast first, pad second (single pass; no pass at all when already aligned).
    a_p = _prep(A, n_pad, n_pad, bf)
    x_p = _prep(X, n_pad, c_in_p, bf)
    w1t = _prep(W1.T, c_in_p, c_hid_p, bf)
    w2t = _prep(W2.T, c_hid_p, c_out_p, bf)
    b1_p = _prep_bias(b1, c_hid_p)
    b2_p = _prep_bias(b2, c_out_p)

    budget = _scoped_vmem_bytes()
    if use_fused is None:
        use_fused = _fused_fits(n_pad, c_in_p, c_hid_p, c_out_p, budget)

    if use_fused:
        out_p = _gcn_fused(a_p, x_p, w1t, b1_p, w2t, b2_p, vmem_limit=budget)
    else:
        # Layer 1: H = relu(Linear1(A @ X)); kept bf16 + lane-dense for layer 2.
        h_p = _gcn_layer(a_p, x_p, w1t, b1_p, apply_relu=True,
                         out_dtype=bf, budget=budget)
        # Layer 2: out = Linear2(A @ H).
        out_p = _gcn_layer(a_p, h_p, w2t, b2_p, apply_relu=False,
                           out_dtype=jnp.float32, budget=budget)
    return out_p[:n, :c_out]


# ----------------------------- references -------------------------------------

def gcn_reference_f32(A, X, W1, b1, W2, b2):
    h = jnp.maximum(jnp.dot(A, X) @ W1.T + b1, 0.0)
    return jnp.dot(A, h) @ W2.T + b2


def gcn_reference_bf16(A, X, W1, b1, W2, b2):
    """Emulates the kernel's bf16-operand / f32-accumulate arithmetic (fused path)."""
    bf = jnp.bfloat16
    ax = jnp.dot(A.astype(bf), X.astype(bf), preferred_element_type=jnp.float32)
    h = jnp.dot(ax.astype(bf), W1.T.astype(bf),
                preferred_element_type=jnp.float32) + b1
    h = jnp.maximum(h, 0.0).astype(bf)
    ah = jnp.dot(A.astype(bf), h, preferred_element_type=jnp.float32)
    return jnp.dot(ah.astype(bf), W2.T.astype(bf),
                   preferred_element_type=jnp.float32) + b2


# ----------------------------- self-test --------------------------------------

if __name__ == "__main__":
    def make_inputs(key, n, c_in, c_hid, c_out, w_scale):
        ks = jax.random.split(key, 6)
        A_raw = jax.random.uniform(ks[0], (n, n), dtype=jnp.float32)
        A = (A_raw + A_raw.T) * 0.5 + jnp.eye(n, dtype=jnp.float32)
        A = A / jnp.sum(A, axis=1, keepdims=True)          # row-normalized adjacency
        X = jax.random.normal(ks[1], (n, c_in), dtype=jnp.float32)
        W1 = jax.random.normal(ks[2], (c_hid, c_in), dtype=jnp.float32) * w_scale
        b1 = jax.random.normal(ks[3], (c_hid,), dtype=jnp.float32) * 0.1
        W2 = jax.random.normal(ks[4], (c_out, c_hid), dtype=jnp.float32) * w_scale
        b2 = jax.random.normal(ks[5], (c_out,), dtype=jnp.float32) * 0.1
        return A, X, W1, b1, W2, b2

    fwd = jax.jit(gcn_forward, static_argnames=("use_fused",))
    k1, k2 = jax.random.split(jax.random.PRNGKey(0))

    # --- toy shapes (N=16, in=16, hid=32, out=8): exercises the fused single-call path.
    A, X, W1, b1, W2, b2 = make_inputs(k1, 16, 16, 32, 8, 0.1)
    out = jax.block_until_ready(fwd(A, X, W1, b1, W2, b2))
    assert out.shape == (16, 8), out.shape
    assert jnp.allclose(out, gcn_reference_bf16(A, X, W1, b1, W2, b2),
                        atol=2e-3, rtol=2e-3), "fused: mismatch vs bf16 reference"
    assert jnp.allclose(out, gcn_reference_f32(A, X, W1, b1, W2, b2),
                        atol=3e-2, rtol=3e-2), "fused: mismatch vs f32 reference"

    # --- moderate shapes: exercises the tiled path (hoisted-XW layer 1, epilogue
    #     Linear layer 2, resident X, full-K A slabs, 2 "parallel" row tiles).
    A, X, W1, b1, W2, b2 = make_inputs(k2, 512, 200, 96, 64, 0.05)
    out = jax.block_until_ready(fwd(A, X, W1, b1, W2, b2, use_fused=False))
    assert out.shape == (512, 64), out.shape
    assert jnp.allclose(out, gcn_reference_f32(A, X, W1, b1, W2, b2),
                        atol=3e-2, rtol=3e-2), "tiled: mismatch vs f32 reference"

    print("KERNEL_OK")
</pallas_src>

<mosaic_0001>
module attributes {stable_mosaic.version = 11 : i64} {
  func.func @_gcn_fused_kernel(%arg0: i32, %arg1: memref<128x128xbf16, #tpu.memory_space<vmem>>, %arg2: memref<128x128xbf16, #tpu.memory_space<vmem>>, %arg3: memref<128x128xbf16, #tpu.memory_space<vmem>>, %arg4: memref<1x128xf32, #tpu.memory_space<vmem>>, %arg5: memref<128x128xbf16, #tpu.memory_space<vmem>>, %arg6: memref<1x128xf32, #tpu.memory_space<vmem>>, %arg7: memref<128x128xf32, #tpu.memory_space<vmem>>) attributes {dimension_semantics = [#tpu.dimension_semantics<arbitrary>], iteration_bounds = array<i64: 1>, scalar_prefetch = 0 : i64, scratch_operands = 0 : i64, tpu.core_type = #tpu.core_type<tc>, window_params = [{pipeline_mode = #tpu.pipeline_mode<synchronous>, transform_indices = @transform_0, window_bounds = array<i64: 128, 128>}, {pipeline_mode = #tpu.pipeline_mode<synchronous>, transform_indices = @transform_1, window_bounds = array<i64: 128, 128>}, {pipeline_mode = #tpu.pipeline_mode<synchronous>, transform_indices = @transform_2, window_bounds = array<i64: 128, 128>}, {pipeline_mode = #tpu.pipeline_mode<synchronous>, transform_indices = @transform_3, window_bounds = array<i64: 1, 128>}, {pipeline_mode = #tpu.pipeline_mode<synchronous>, transform_indices = @transform_4, window_bounds = array<i64: 128, 128>}, {pipeline_mode = #tpu.pipeline_mode<synchronous>, transform_indices = @transform_5, window_bounds = array<i64: 1, 128>}, {pipeline_mode = #tpu.pipeline_mode<synchronous>, transform_indices = @transform_6, window_bounds = array<i64: 128, 128>}]} {
    %c0 = arith.constant 0 : index
    %c0_0 = arith.constant 0 : index
    %0 = vector.load %arg1[%c0, %c0_0] : memref<128x128xbf16, #tpu.memory_space<vmem>>, vector<128x128xbf16>
    %c0_1 = arith.constant 0 : index
    %c0_2 = arith.constant 0 : index
    %1 = vector.load %arg2[%c0_1, %c0_2] : memref<128x128xbf16, #tpu.memory_space<vmem>>, vector<128x128xbf16>
    %cst = arith.constant dense<0.000000e+00> : vector<128x128xf32>
    %2 = tpu.matmul %0, %1, %cst {dimension_numbers = #tpu.dot_dimension_numbers<[1], [0], [0], [1], [0, 0, 1, 1], [], []>} : vector<128x128xbf16>, vector<128x128xbf16>, vector<128x128xf32> -> vector<128x128xf32>
    %3 = arith.truncf %2 : vector<128x128xf32> to vector<128x128xbf16>
    %c0_3 = arith.constant 0 : index
    %c0_4 = arith.constant 0 : index
    %4 = vector.load %arg3[%c0_3, %c0_4] : memref<128x128xbf16, #tpu.memory_space<vmem>>, vector<128x128xbf16>
    %cst_5 = arith.constant dense<0.000000e+00> : vector<128x128xf32>
    %5 = tpu.matmul %3, %4, %cst_5 {dimension_numbers = #tpu.dot_dimension_numbers<[1], [0], [0], [1], [0, 0, 1, 1], [], []>} : vector<128x128xbf16>, vector<128x128xbf16>, vector<128x128xf32> -> vector<128x128xf32>
    %c0_6 = arith.constant 0 : index
    %c0_7 = arith.constant 0 : index
    %6 = vector.load %arg4[%c0_6, %c0_7] : memref<1x128xf32, #tpu.memory_space<vmem>>, vector<1x128xf32>
    %7 = vector.broadcast %6 : vector<1x128xf32> to vector<128x128xf32>
    %8 = arith.addf %5, %7 : vector<128x128xf32>
    %cst_8 = arith.constant 0.000000e+00 : f32
    %9 = vector.broadcast %cst_8 : f32 to vector<128x128xf32>
    %10 = arith.maximumf %8, %9 : vector<128x128xf32>
    %11 = arith.truncf %10 : vector<128x128xf32> to vector<128x128xbf16>
    %cst_9 = arith.constant dense<0.000000e+00> : vector<128x128xf32>
    %12 = tpu.matmul %0, %11, %cst_9 {dimension_numbers = #tpu.dot_dimension_numbers<[1], [0], [0], [1], [0, 0, 1, 1], [], []>} : vector<128x128xbf16>, vector<128x128xbf16>, vector<128x128xf32> -> vector<128x128xf32>
    %13 = arith.truncf %12 : vector<128x128xf32> to vector<128x128xbf16>
    %c0_10 = arith.constant 0 : index
    %c0_11 = arith.constant 0 : index
    %14 = vector.load %arg5[%c0_10, %c0_11] : memref<128x128xbf16, #tpu.memory_space<vmem>>, vector<128x128xbf16>
    %cst_12 = arith.constant dense<0.000000e+00> : vector<128x128xf32>
    %15 = tpu.matmul %13, %14, %cst_12 {dimension_numbers = #tpu.dot_dimension_numbers<[1], [0], [0], [1], [0, 0, 1, 1], [], []>} : vector<128x128xbf16>, vector<128x128xbf16>, vector<128x128xf32> -> vector<128x128xf32>
    %c0_13 = arith.constant 0 : index
    %c0_14 = arith.constant 0 : index
    %16 = vector.load %arg6[%c0_13, %c0_14] : memref<1x128xf32, #tpu.memory_space<vmem>>, vector<1x128xf32>
    %17 = vector.broadcast %16 : vector<1x128xf32> to vector<128x128xf32>
    %18 = arith.addf %15, %17 : vector<128x128xf32>
    %c0_15 = arith.constant 0 : index
    %c0_16 = arith.constant 0 : index
    %19 = vector.load %arg7[%c0_15, %c0_16] : memref<128x128xf32, #tpu.memory_space<vmem>>, vector<128x128xf32>
    tpu.vector_store %arg7[%c0_15, %c0_16], %18 {strides = array<i32>} : memref<128x128xf32, #tpu.memory_space<vmem>>, vector<128x128xf32>,
    return
  }
  func.func @transform_0(%arg0: i32) -> (i32, i32) {
    %c0_i32 = arith.constant 0 : i32
    %c0_i32_0 = arith.constant 0 : i32
    %c0_i32_1 = arith.constant 0 : i32
    return %c0_i32, %c0_i32_0 : i32, i32
  }
  func.func @transform_1(%arg0: i32) -> (i32, i32) {
    %c0_i32 = arith.constant 0 : i32
    %c0_i32_0 = arith.constant 0 : i32
    %c0_i32_1 = arith.constant 0 : i32
    return %c0_i32, %c0_i32_0 : i32, i32
  }
  func.func @transform_2(%arg0: i32) -> (i32, i32) {
    %c0_i32 = arith.constant 0 : i32
    %c0_i32_0 = arith.constant 0 : i32
    %c0_i32_1 = arith.constant 0 : i32
    return %c0_i32, %c0_i32_0 : i32, i32
  }
  func.func @transform_3(%arg0: i32) -> (i32, i32) {
    %c0_i32 = arith.constant 0 : i32
    %c0_i32_0 = arith.constant 0 : i32
    %c0_i32_1 = arith.constant 0 : i32
    return %c0_i32, %c0_i32_0 : i32, i32
  }
  func.func @transform_4(%arg0: i32) -> (i32, i32) {
    %c0_i32 = arith.constant 0 : i32
    %c0_i32_0 = arith.constant 0 : i32
    %c0_i32_1 = arith.constant 0 : i32
    return %c0_i32, %c0_i32_0 : i32, i32
  }
  func.func @transform_5(%arg0: i32) -> (i32, i32) {
    %c0_i32 = arith.constant 0 : i32
    %c0_i32_0 = arith.constant 0 : i32
    %c0_i32_1 = arith.constant 0 : i32
    return %c0_i32, %c0_i32_0 : i32, i32
  }
  func.func @transform_6(%arg0: i32) -> (i32, i32) {
    %c0_i32 = arith.constant 0 : i32
    %c0_i32_0 = arith.constant 0 : i32
    %c0_i32_1 = arith.constant 0 : i32
    return %c0_i32, %c0_i32_0 : i32, i32
  }
}

</mosaic_0001>

<bundles_post_ra>
// kernel: gcn_forward.1
= control target key start
LH: loop header
LB: loop body
LE: loop exit
PB: predicated region body
PF: predicated region fallthrough
CT: control target
= control target key end

     0   :  { %11 = vsyncpa [#allocation3], 0  ;;  %s1455_s0 = inlined_call_operand.hbm [shape: bf16[128,128], index: 0, kind: input, shape index: {}]   ;;  %s1456_s1 = inlined_call_operand.hbm [shape: bf16[128,128], index: 1, kind: input, shape index: {}]   ;;  %s1457_s2 = inlined_call_operand.hbm [shape: bf16[128,128], index: 2, kind: input, shape index: {}]   ;;  %s1458_s3 = inlined_call_operand.hbm [shape: f32[1,128], index: 3, kind: input, shape index: {}]   ;;  %s1459_s4 = inlined_call_operand.hbm [shape: bf16[128,128], index: 4, kind: input, shape index: {}]   ;;  %s1460_s5 = inlined_call_operand.hbm [shape: f32[1,128], index: 5, kind: input, shape index: {}]   ;;  %s1461_s6 = inlined_call_operand.hbm [shape: f32[128,128], index: 6, kind: output, shape index: {}]  }
   0x1   :  { %12 = vsyncpa [#allocation6], 0 }
   0x2   :  { %13 = vsyncpa [#allocation9], 0 }
   0x3   :  { %14 = vsyncpa [#allocation12], 0 }
   0x4   :  { %15 = vsyncpa [#allocation4], 0  ;;  %s1270_s21 = smov [#allocation5]   ;;  %s1271_s23 = smov [#allocation8]  }
   0x5   :  { %s33_s22 = sshll.u32 %s1270_s21, 4  ;;  %s58_s24 = sshll.u32 %s1271_s23, 4  ;;  %s34_s22 = int_to_ptr.vmem [resolvable:$true] %s33_s22  ;;  %s1316_s24 = int_to_ptr.vmem [resolvable:$true] %s58_s24 }
   0x6   :  { %s1106_s27 = scalar_lea.hbm %s1456_s1, 1024 }
   0x7   :  { %p1107_p0 = scmp.ne.s32.totalorder %s1456_s1, %s1106_s27  ;;  %p1110_p1 = scmp.lt.u32.totalorder %s1106_s27, %s1456_s1 }
   0x9   :  { %p1112_p2 = pnand %p1110_p1, %p1107_p0 }
   0xb   :  { %1115 = shalt.err (!%p1112_p2)
}
   0xc   :  { %s1116_s8 = scalar_lea.vmem %s34_s22, 1024  ;;  %p1121_p4 = scmp.lt.s32.totalorder %s34_s22, %s34_s22 }
   0xd   :  { %p1117_p3 = scmp.ne.s32.totalorder %s34_s22, %s1116_s8  ;;  %p1122_p5 = scmp.lt.s32.totalorder %s1116_s8, %s1116_s8 }
   0xf   :  { %p1123_p6 = por %p1122_p5, %p1121_p4 }
  0x11   :  { %p1124_p7 = pnand %p1123_p6, %p1117_p3 }
  0x13   :  { %1127 = shalt.err (!%p1124_p7)
}
  0x14   :  { %s1272_s9 = smov 64   ;;  %s1273_s10 = smov 4  }
  0x15   :  { %39 = dma.hbm_to_vmem [thread:$0]  %s1456_s1, 1024, %s34_s22, [#allocation6], %s1272_s9, %s1272_s9, %s1273_s10  }
  0x16   :  { %s1128_s15 = scalar_lea.hbm %s1458_s3, 16 }
  0x17   :  { %p1129_p8 = scmp.ne.s32.totalorder %s1458_s3, %s1128_s15  ;;  %p1132_p9 = scmp.lt.u32.totalorder %s1128_s15, %s1458_s3 }
  0x19   :  { %p1134_p10 = pnand %p1132_p9, %p1129_p8 }
  0x1b   :  { %1137 = shalt.err (!%p1134_p10)
}
  0x1c   :  { %s1138_s20 = scalar_lea.vmem %s1316_s24, 16  ;;  %s1142_s1 = scalar_lea.vmem %s1316_s24, 32 }
  0x1d   :  { %p1139_p11 = scmp.ne.s32.totalorder %s1316_s24, %s1138_s20  ;;  %p1143_p12 = scmp.lt.s32.totalorder %s1316_s24, %s1316_s24 }
  0x1e   :  { %p1144_p13 = scmp.lt.s32.totalorder %s1142_s1, %s1138_s20 }
  0x20   :  { %p1145_p0 = por %p1144_p13, %p1143_p12 }
  0x22   :  { %p1146_p1 = pnand %p1145_p0, %p1139_p11 }
  0x24   :  { %1149 = shalt.err (!%p1146_p1)
}
  0x25   :  { %61 = dma.hbm_to_vmem [thread:$0]  %s1458_s3, 16, %s1316_s24, [#allocation9]  }
  0x26   :  { %s1274_s23 = smov [#allocation2]   ;;  %s1275_s26 = smov [#allocation7]  }
  0x27   :  { %s21_s25 = sshll.u32 %s1274_s23, 4  ;;  %s45_s27 = sshll.u32 %s1275_s26, 4  ;;  %s22_s25 = int_to_ptr.vmem [resolvable:$true] %s21_s25  ;;  %s1351_s27 = int_to_ptr.vmem [resolvable:$true] %s45_s27 }
  0x28   :  { %s1150_s30 = scalar_lea.hbm %s1455_s0, 1024 }
  0x29   :  { %p1151_p2 = scmp.ne.s32.totalorder %s1455_s0, %s1150_s30  ;;  %p1154_p3 = scmp.lt.u32.totalorder %s1150_s30, %s1455_s0 }
  0x2b   :  { %p1156_p4 = pnand %p1154_p3, %p1151_p2 }
  0x2d   :  { %1159 = shalt.err (!%p1156_p4)
}
  0x2e   :  { %s1160_s3 = scalar_lea.vmem %s22_s25, 1024  ;;  %p1165_p6 = scmp.lt.s32.totalorder %s22_s25, %s22_s25 }
  0x2f   :  { %p1161_p5 = scmp.ne.s32.totalorder %s22_s25, %s1160_s3  ;;  %p1166_p7 = scmp.lt.s32.totalorder %s1160_s3, %s1160_s3 }
  0x31   :  { %p1167_p8 = por %p1166_p7, %p1165_p6 }
  0x33   :  { %p1168_p9 = pnand %p1167_p8, %p1161_p5 }
  0x35   :  { %1171 = shalt.err (!%p1168_p9)
}
  0x36   :  { %27 = dma.hbm_to_vmem [thread:$0]  %s1455_s0, 1024, %s22_s25, [#allocation3], %s1272_s9, %s1272_s9, %s1273_s10  }
  0x37   :  { %s1172_s16 = scalar_lea.hbm %s1457_s2, 1024 }
  0x38   :  { %p1173_p10 = scmp.ne.s32.totalorder %s1457_s2, %s1172_s16  ;;  %p1176_p11 = scmp.lt.u32.totalorder %s1172_s16, %s1457_s2 }
  0x3a   :  { %p1178_p12 = pnand %p1176_p11, %p1173_p10 }
  0x3c   :  { %1181 = shalt.err (!%p1178_p12)
}
  0x3d   :  { %s1182_s1 = scalar_lea.vmem %s1351_s27, 1024  ;;  %p1187_p0 = scmp.lt.s32.totalorder %s1351_s27, %s1351_s27 }
  0x3e   :  { %p1183_p13 = scmp.ne.s32.totalorder %s1351_s27, %s1182_s1  ;;  %p1188_p1 = scmp.lt.s32.totalorder %s1182_s1, %s1182_s1 }
  0x40   :  { %p1189_p2 = por %p1188_p1, %p1187_p0 }
  0x42   :  { %p1190_p3 = pnand %p1189_p2, %p1183_p13 }
  0x44   :  { %1193 = shalt.err (!%p1190_p3)
}
  0x45   :  { %51 = dma.hbm_to_vmem [thread:$0]  %s1457_s2, 1024, %s1351_s27, [#allocation6], %s1272_s9, %s1272_s9, %s1273_s10  }
  0x46   :  { %s1276_s22 = smov [#allocation10]   ;;  %s1277_s25 = smov [#allocation11]  }
  0x47   :  { %s67_s23 = sshll.u32 %s1276_s22, 4  ;;  %s80_s26 = sshll.u32 %s1277_s25, 4  ;;  %s68_s23 = int_to_ptr.vmem [resolvable:$true] %s67_s23  ;;  %s81_s26 = int_to_ptr.vmem [resolvable:$true] %s80_s26 }
  0x48   :  { %s1194_s30 = scalar_lea.hbm %s1459_s4, 1024 }
  0x49   :  { %p1195_p4 = scmp.ne.s32.totalorder %s1459_s4, %s1194_s30  ;;  %p1198_p5 = scmp.lt.u32.totalorder %s1194_s30, %s1459_s4 }
  0x4b   :  { %p1200_p6 = pnand %p1198_p5, %p1195_p4 }
  0x4d   :  { %1203 = shalt.err (!%p1200_p6)
}
  0x4e   :  { %s1204_s2 = scalar_lea.vmem %s68_s23, 1024  ;;  %p1209_p8 = scmp.lt.s32.totalorder %s68_s23, %s68_s23 }
  0x4f   :  { %p1205_p7 = scmp.ne.s32.totalorder %s68_s23, %s1204_s2  ;;  %p1210_p9 = scmp.lt.s32.totalorder %s1204_s2, %s1204_s2 }
  0x51   :  { %p1211_p10 = por %p1210_p9, %p1209_p8 }
  0x53   :  { %p1212_p11 = pnand %p1211_p10, %p1205_p7 }
  0x55   :  { %1215 = shalt.err (!%p1212_p11)
}
  0x56   :  { %73 = dma.hbm_to_vmem [thread:$0]  %s1459_s4, 1024, %s68_s23, [#allocation9], %s1272_s9, %s1272_s9, %s1273_s10  }
  0x57   :  { %s1216_s14 = scalar_lea.hbm %s1460_s5, 16 }
  0x58   :  { %p1217_p12 = scmp.ne.s32.totalorder %s1460_s5, %s1216_s14  ;;  %p1220_p13 = scmp.lt.u32.totalorder %s1216_s14, %s1460_s5 }
  0x5a   :  { %p1222_p0 = pnand %p1220_p13, %p1217_p12 }
  0x5c   :  { %1225 = shalt.err (!%p1222_p0)
}
  0x5d   :  { %s1226_s19 = scalar_lea.vmem %s81_s26, 16  ;;  %s1230_s20 = scalar_lea.vmem %s81_s26, 32 }
  0x5e   :  { %p1227_p1 = scmp.ne.s32.totalorder %s81_s26, %s1226_s19  ;;  %p1231_p2 = scmp.lt.s32.totalorder %s81_s26, %s81_s26 }
  0x5f   :  { %p1232_p3 = scmp.lt.s32.totalorder %s1230_s20, %s1226_s19 }
  0x61   :  { %p1233_p4 = por %p1232_p3, %p1231_p2 }
  0x63   :  { %p1234_p5 = pnand %p1233_p4, %p1227_p1 }
  0x65   :  { %1237 = shalt.err (!%p1234_p5)
}
  0x66   :  { %83 = dma.hbm_to_vmem [thread:$0]  %s1460_s5, 16, %s81_s26, [#allocation12]  }
  0x67   :  { %1260 = dma.done.wait [#allocation3], 1024  }
  0x68   :  { %1261 = vsyncadd [#allocation3], 4294966272 }
  0x69   :  { %1262 = dma.done.wait [#allocation6], 2048  }
  0x6a   :  { %1263 = vsyncadd [#allocation6], 4294965248 }
  0x6b   :  { %1264 = dma.done.wait [#allocation9], 1040  }
  0x6c   :  { %1265 = vsyncadd [#allocation9], 4294966256 }
  0x6d   :  { %1266 = dma.done.wait [#allocation12], 16  }
  0x6e   :  { %1267 = vsyncadd [#allocation12], 4294967280  ;;  %v1074_v0 = vld [vmem:[#allocation5] sm:$0xff]   ;;  %v1075_v1 = vld [vmem:[#allocation5 + $0x8] sm:$0xff]   ;;  %s1278_s5 = smov [#allocation13]  }
  0x6f   :  { %935 = vmatprep.subr.bf16.mxu0 %v1074_v0  ;;  %v1076_v2 = vld [vmem:[#allocation5 + $0x10] sm:$0xff]   ;;  %v1077_v3 = vld [vmem:[#allocation5 + $0x18] sm:$0xff]   ;;  %v1082_v4 = vld [vmem:[#allocation2] sm:$0xff]   ;;  %s822_s10 = sshll.u32 %s1278_s5, 4  ;;  %s823_s10 = int_to_ptr.vmem [resolvable:$true] %s822_s10 }
  0x70   :  { %936 = vmatpush3.bf16.msra.mxu0 %v1074_v0  ;;  %951 = vmatprep.mubr.bf16.mxu0 %v1082_v4  ;;  %v1078_v5 = vld [vmem:[#allocation5 + $0x20] sm:$0xff]   ;;  %v1079_v6 = vld [vmem:[#allocation5 + $0x28] sm:$0xff]   ;;  %v1080_v9 = vld [vmem:[#allocation5 + $0x30] sm:$0xff]   ;;  %s1238_s1 = scalar_lea.vmem %s823_s10, 2048  ;;  %p1243_p7 = scmp.lt.s32.totalorder %s823_s10, %s823_s10 }
  0x71   :  { %937 = vmatprep.subr.bf16.mxu0 %v1075_v1  ;;  %v1090_v7 = vld [vmem:[#allocation7] sm:$0xff]   ;;  %v1091_v8 = vld [vmem:[#allocation7 + $0x8] sm:$0xff]   ;;  %v1092_v10 = vld [vmem:[#allocation7 + $0x10] sm:$0xff]   ;;  %p1239_p6 = scmp.ne.s32.totalorder %s823_s10, %s1238_s1  ;;  %p1244_p8 = scmp.lt.s32.totalorder %s1238_s1, %s1238_s1 }
  0x72   :  { %967 = vmatprep.subr.bf16.mxu1 %v1090_v7  ;;  %v1081_v11 = vld [vmem:[#allocation5 + $0x38] sm:$0xff]   ;;  %v1094_v13 = vld [vmem:[#allocation7 + $0x20] sm:$0xff]   ;;  %v1415_v14 = vld [vmem:[#allocation2 + $0x8] sm:$0xff]  }
  0x73   :  { %968 = vmatpush3.bf16.msra.mxu1 %v1090_v7  ;;  %v1093_v12 = vld [vmem:[#allocation7 + $0x18] sm:$0xff]   ;;  %v1417_v15 = vld [vmem:[#allocation2 + $0x10] sm:$0xff]   ;;  %v1095_v16 = vld [vmem:[#allocation7 + $0x28] sm:$0xff]   ;;  %p1245_p9 = por %p1244_p8, %p1243_p7 }
  0x74   :  { %938 = vmatpush3.bf16.msra.mxu0 %v1075_v1  ;;  %969 = vmatprep.subr.bf16.mxu1 %v1091_v8  ;;  %v1096_v17 = vld [vmem:[#allocation7 + $0x30] sm:$0xff]   ;;  %v1421_v18 = vld [vmem:[#allocation2 + $0x18] sm:$0xff]   ;;  %v1423_v19 = vld [vmem:[#allocation2 + $0x20] sm:$0xff]  }
  0x75   :  { %939 = vmatprep.subr.bf16.mxu0 %v1076_v2  ;;  %v1427_v20 = vld [vmem:[#allocation2 + $0x28] sm:$0xff]   ;;  %v1429_v21 = vld [vmem:[#allocation2 + $0x30] sm:$0xff]   ;;  %v1433_v22 = vld [vmem:[#allocation2 + $0x38] sm:$0xff]   ;;  %p1246_p10 = pnand %p1245_p9, %p1239_p6 }
  0x76   :  { %v1097_v23 = vld [vmem:[#allocation7 + $0x38] sm:$0xff]   ;;  %v1098_v48 = vld [vmem:[#allocation10] sm:$0xff]   ;;  %v1099_v49 = vld [vmem:[#allocation10 + $0x8] sm:$0xff]  }
  0x77   :  { %970 = vmatpush3.bf16.msra.mxu1 %v1091_v8  ;;  %v1100_v50 = vld [vmem:[#allocation10 + $0x10] sm:$0xff]   ;;  %v1101_v51 = vld [vmem:[#allocation10 + $0x18] sm:$0xff]   ;;  %v1102_v52 = vld [vmem:[#allocation10 + $0x20] sm:$0xff]  }
  0x78   :  { %940 = vmatpush3.bf16.msra.mxu0 %v1076_v2  ;;  %971 = vmatprep.subr.bf16.mxu1 %v1092_v10  ;;  %v1103_v53 = vld [vmem:[#allocation10 + $0x28] sm:$0xff]   ;;  %v1104_v54 = vld [vmem:[#allocation10 + $0x30] sm:$0xff]   ;;  %v853_v55 = vld [vmem:[#allocation8] ss:$0 sm:$0xff] }
  0x79   :  { %941 = vmatprep.subr.bf16.mxu0 %v1077_v3 }
  0x7b   :  { %972 = vmatpush3.bf16.msra.mxu1 %v1092_v10 }
  0x7c   :  { %942 = vmatpush3.bf16.msra.mxu0 %v1077_v3  ;;  %973 = vmatprep.subr.bf16.mxu1 %v1093_v12 }
  0x7d   :  { %943 = vmatprep.subr.bf16.mxu0 %v1078_v5 }
  0x7f   :  { %974 = vmatpush3.bf16.msra.mxu1 %v1093_v12 }
  0x80   :  { %944 = vmatpush3.bf16.msra.mxu0 %v1078_v5  ;;  %975 = vmatprep.subr.bf16.mxu1 %v1094_v13 }
  0x81   :  { %945 = vmatprep.subr.bf16.mxu0 %v1079_v6 }
  0x83   :  { %976 = vmatpush3.bf16.msra.mxu1 %v1094_v13 }
  0x84   :  { %946 = vmatpush3.bf16.msra.mxu0 %v1079_v6  ;;  %977 = vmatprep.subr.bf16.mxu1 %v1095_v16 }
  0x85   :  { %947 = vmatprep.subr.bf16.mxu0 %v1080_v9 }
  0x87   :  { %978 = vmatpush3.bf16.msra.mxu1 %v1095_v16 }
  0x88   :  { %948 = vmatpush3.bf16.msra.mxu0 %v1080_v9  ;;  %979 = vmatprep.subr.bf16.mxu1 %v1096_v17 }
  0x89   :  { %949 = vmatprep.subr.bf16.mxu0 %v1081_v11 }
  0x8b   :  { %980 = vmatpush3.bf16.msra.mxu1 %v1096_v17 }
  0x8c   :  { %950 = vmatpush3.bf16.msra.mxu0 %v1081_v11  ;;  %981 = vmatprep.subr.bf16.mxu1 %v1097_v23 }
  0x8f   :  { %952 = vmatmul.mubr.bf16.vlgmr.msra.gmra.mrb[0].mxu0 %v1415_v14  ;;  %982 = vmatpush3.bf16.msra.mxu1 %v1097_v23 }
  0x90   :  { %955 = vmatprep.mubr.bf16.mxu0 %v1417_v15  ;;  %1031 = vmatprep.subr.bf16.mxu1 %v1098_v48 }
  0x97   :  { %956 = vmatmul.mubr.bf16.gmra.mrb[4].mxu0 %v1421_v18 }
  0x98   :  { %959 = vmatprep.mubr.bf16.mxu0 %v1423_v19 }
  0x9f   :  { %960 = vmatmul.mubr.bf16.gmra.mrb[8].mxu0 %v1427_v20 }
  0xa0   :  { %963 = vmatprep.mubr.bf16.mxu0 %v1429_v21 }
  0xa7   :  { %964 = vmatmul.mubr.bf16.gmra.mrb[12].mxu0 %v1433_v22 }
  0xa8   :  { %1015 = vmatprep.mubr.bf16.mxu0 %v1082_v4 }
 0x162   :  { %v953_v24 = vpop.f32.mrb[0].mxu0 }
 0x163   :  { %v265_v25 = vpop.f32.mrb[1].mxu0 }
 0x164   :  { %v954_v26 = vpop.f32.mrb[2].mxu0 }
 0x165   :  { %v329_v27 = vpack.c.bf16 %v954_v26, %v953_v24  ;;  %v268_v28 = vpop.f32.mrb[3].mxu0 }
 0x166   :  { %v328_v29 = vpack.c.bf16 %v268_v28, %v265_v25 }
 0x168   :  { %983 = vmatprep.mubr.bf16.mxu1 %v328_v29 }
 0x169   :  { %984 = vmatmul.mubr.bf16.vlgmr.msra.gmra.mrb[0].mxu1 %v329_v27 }
 0x16a   :  { %v957_v30 = vpop.f32.mrb[4].mxu0  ;;  %1032 = vmatpush3.bf16.msra.mxu1 %v1098_v48 }
 0x16b   :  { %v281_v31 = vpop.f32.mrb[5].mxu0  ;;  %1033 = vmatprep.subr.bf16.mxu1 %v1099_v49 }
 0x16c   :  { %v958_v32 = vpop.f32.mrb[6].mxu0 }
 0x16d   :  { %v331_v33 = vpack.c.bf16 %v958_v32, %v957_v30  ;;  %v284_v34 = vpop.f32.mrb[7].mxu0 }
 0x16e   :  { %v330_v35 = vpack.c.bf16 %v284_v34, %v281_v31  ;;  %1034 = vmatpush3.bf16.msra.mxu1 %v1099_v49 }
 0x16f   :  { %1035 = vmatprep.subr.bf16.mxu1 %v1100_v50 }
 0x170   :  { %987 = vmatprep.mubr.bf16.mxu1 %v330_v35 }
 0x171   :  { %988 = vmatmul.mubr.bf16.gmra.mrb[4].mxu1 %v331_v33 }
 0x172   :  { %v961_v36 = vpop.f32.mrb[8].mxu0  ;;  %1036 = vmatpush3.bf16.msra.mxu1 %v1100_v50 }
 0x173   :  { %v297_v37 = vpop.f32.mrb[9].mxu0  ;;  %1037 = vmatprep.subr.bf16.mxu1 %v1101_v51 }
 0x174   :  { %v962_v38 = vpop.f32.mrb[10].mxu0 }
 0x175   :  { %v333_v39 = vpack.c.bf16 %v962_v38, %v961_v36  ;;  %v300_v40 = vpop.f32.mrb[11].mxu0 }
 0x176   :  { %v332_v41 = vpack.c.bf16 %v300_v40, %v297_v37  ;;  %1038 = vmatpush3.bf16.msra.mxu1 %v1101_v51 }
 0x177   :  { %1039 = vmatprep.subr.bf16.mxu1 %v1102_v52 }
 0x178   :  { %991 = vmatprep.mubr.bf16.mxu1 %v332_v41 }
 0x179   :  { %992 = vmatmul.mubr.bf16.gmra.mrb[8].mxu1 %v333_v39 }
 0x17a   :  { %v965_v42 = vpop.f32.mrb[12].mxu0  ;;  %1040 = vmatpush3.bf16.msra.mxu1 %v1102_v52 }
 0x17b   :  { %v313_v43 = vpop.f32.mrb[13].mxu0  ;;  %1041 = vmatprep.subr.bf16.mxu1 %v1103_v53 }
 0x17c   :  { %v966_v44 = vpop.f32.mrb[14].mxu0 }
 0x17d   :  { %v335_v45 = vpack.c.bf16 %v966_v44, %v965_v42  ;;  %v316_v46 = vpop.f32.mrb[15].mxu0 }
 0x17e   :  { %v334_v47 = vpack.c.bf16 %v316_v46, %v313_v43  ;;  %1042 = vmatpush3.bf16.msra.mxu1 %v1103_v53 }
 0x17f   :  { %1043 = vmatprep.subr.bf16.mxu1 %v1104_v54 }
 0x180   :  { %995 = vmatprep.mubr.bf16.mxu1 %v334_v47 }
 0x181   :  { %996 = vmatmul.mubr.bf16.gmra.mrb[12].mxu1 %v335_v45 }
 0x182   :  { %1044 = vmatpush3.bf16.msra.mxu1 %v1104_v54 }
 0x23c   :  { %v985_v56 = vpop.f32.mrb[0].mxu1 }
 0x23d   :  { %v450_v57 = vadd.f32 %v985_v56, %v853_v55  ;;  %v441_v58 = vpop.f32.mrb[1].mxu1 }
 0x23e   :  { %v442_v59 = vadd.f32 %v853_v55, %v441_v58  ;;  %v986_v60 = vpop.f32.mrb[2].mxu1 }
 0x23f   :  { %v453_v61 = vadd.f32 %v986_v60, %v853_v55  ;;  %v444_v62 = vpop.f32.mrb[3].mxu1  ;;  %v506_v0 = vmax.f32 %v450_v57, 0.0 }
 0x240   :  { %v445_v63 = vadd.f32 %v853_v55, %v444_v62  ;;  %v504_v2 = vmax.f32 %v442_v59, 0.0 }
 0x241   :  { %v507_v1 = vmax.f32 %v453_v61, 0.0 }
 0x242   :  { %v505_v3 = vmax.f32 %v445_v63, 0.0 }
 0x243   :  { %v521_v4 = vpack.c.bf16 %v507_v1, %v506_v0 }
 0x244   :  { %v520_v5 = vpack.c.bf16 %v505_v3, %v504_v2  ;;  %v989_v6 = vpop.f32.mrb[4].mxu1 }
 0x245   :  { %v466_v7 = vadd.f32 %v989_v6, %v853_v55  ;;  %v457_v8 = vpop.f32.mrb[5].mxu1 }
 0x246   :  { %v458_v9 = vadd.f32 %v853_v55, %v457_v8  ;;  %v990_v10 = vpop.f32.mrb[6].mxu1  ;;  %999 = vmatprep.subr.bf16.mxu0 %v520_v5 }
 0x247   :  { %v469_v11 = vadd.f32 %v990_v10, %v853_v55  ;;  %v460_v12 = vpop.f32.mrb[7].mxu1  ;;  %1000 = vmatpush3.bf16.msra.mxu0 %v520_v5  ;;  %v510_v16 = vmax.f32 %v466_v7, 0.0 }
 0x248   :  { %v461_v13 = vadd.f32 %v853_v55, %v460_v12  ;;  %1001 = vmatprep.subr.bf16.mxu0 %v521_v4  ;;  %v508_v23 = vmax.f32 %v458_v9, 0.0  ;;  %v862_v9 = vld [vmem:[#allocation11] ss:$0 sm:$0xff] }
 0x249   :  { %v511_v17 = vmax.f32 %v469_v11, 0.0 }
 0x24a   :  { %v509_v24 = vmax.f32 %v461_v13, 0.0 }
 0x24b   :  { %v523_v25 = vpack.c.bf16 %v511_v17, %v510_v16  ;;  %1002 = vmatpush3.bf16.msra.mxu0 %v521_v4 }
 0x24c   :  { %v522_v26 = vpack.c.bf16 %v509_v24, %v508_v23  ;;  %v993_v27 = vpop.f32.mrb[8].mxu1 }
 0x24d   :  { %v482_v28 = vadd.f32 %v993_v27, %v853_v55  ;;  %v473_v29 = vpop.f32.mrb[9].mxu1 }
 0x24e   :  { %v474_v30 = vadd.f32 %v853_v55, %v473_v29  ;;  %v994_v31 = vpop.f32.mrb[10].mxu1  ;;  %1003 = vmatprep.subr.bf16.mxu0 %v522_v26 }
 0x24f   :  { %v485_v32 = vadd.f32 %v994_v31, %v853_v55  ;;  %v476_v33 = vpop.f32.mrb[11].mxu1  ;;  %1004 = vmatpush3.bf16.msra.mxu0 %v522_v26  ;;  %v514_v35 = vmax.f32 %v482_v28, 0.0 }
 0x250   :  { %v477_v34 = vadd.f32 %v853_v55, %v476_v33  ;;  %1005 = vmatprep.subr.bf16.mxu0 %v523_v25  ;;  %v512_v37 = vmax.f32 %v474_v30, 0.0 }
 0x251   :  { %v515_v36 = vmax.f32 %v485_v32, 0.0 }
 0x252   :  { %v513_v38 = vmax.f32 %v477_v34, 0.0 }
 0x253   :  { %v525_v39 = vpack.c.bf16 %v515_v36, %v514_v35  ;;  %1006 = vmatpush3.bf16.msra.mxu0 %v523_v25 }
 0x254   :  { %v524_v40 = vpack.c.bf16 %v513_v38, %v512_v37  ;;  %v997_v41 = vpop.f32.mrb[12].mxu1 }
 0x255   :  { %v498_v42 = vadd.f32 %v997_v41, %v853_v55  ;;  %v489_v43 = vpop.f32.mrb[13].mxu1 }
 0x256   :  { %v490_v44 = vadd.f32 %v853_v55, %v489_v43  ;;  %v998_v45 = vpop.f32.mrb[14].mxu1  ;;  %1007 = vmatprep.subr.bf16.mxu0 %v524_v40 }
 0x257   :  { %v501_v46 = vadd.f32 %v998_v45, %v853_v55  ;;  %v492_v47 = vpop.f32.mrb[15].mxu1  ;;  %1008 = vmatpush3.bf16.msra.mxu0 %v524_v40  ;;  %v518_v49 = vmax.f32 %v498_v42, 0.0 }
 0x258   :  { %v493_v48 = vadd.f32 %v853_v55, %v492_v47  ;;  %1009 = vmatprep.subr.bf16.mxu0 %v525_v39  ;;  %v516_v51 = vmax.f32 %v490_v44, 0.0  ;;  %v1105_v55 = vld [vmem:[#allocation10 + $0x38] sm:$0xff]  }
 0x259   :  { %v519_v50 = vmax.f32 %v501_v46, 0.0  ;;  %1045 = vmatprep.subr.bf16.mxu1 %v1105_v55 }
 0x25a   :  { %v517_v52 = vmax.f32 %v493_v48, 0.0  ;;  %1046 = vmatpush3.bf16.msra.mxu1 %v1105_v55 }
 0x25b   :  { %v527_v53 = vpack.c.bf16 %v519_v50, %v518_v49  ;;  %1010 = vmatpush3.bf16.msra.mxu0 %v525_v39 }
 0x25c   :  { %v526_v54 = vpack.c.bf16 %v517_v52, %v516_v51 }
 0x25e   :  { %1011 = vmatprep.subr.bf16.mxu0 %v526_v54 }
 0x25f   :  { %1012 = vmatpush3.bf16.msra.mxu0 %v526_v54 }
 0x260   :  { %1013 = vmatprep.subr.bf16.mxu0 %v527_v53 }
 0x263   :  { %1014 = vmatpush3.bf16.msra.mxu0 %v527_v53 }
 0x266   :  { %1016 = vmatmul.mubr.bf16.vlgmr.msra.gmra.mrb[16].mxu0 %v1415_v14 }
 0x267   :  { %1019 = vmatprep.mubr.bf16.mxu0 %v1417_v15 }
 0x26e   :  { %1020 = vmatmul.mubr.bf16.gmra.mrb[20].mxu0 %v1421_v18 }
 0x26f   :  { %1023 = vmatprep.mubr.bf16.mxu0 %v1423_v19 }
 0x276   :  { %1024 = vmatmul.mubr.bf16.gmra.mrb[24].mxu0 %v1427_v20 }
 0x277   :  { %1027 = vmatprep.mubr.bf16.mxu0 %v1429_v21 }
 0x27e   :  { %1028 = vmatmul.mubr.bf16.gmra.mrb[28].mxu0 %v1433_v22 }
 0x339   :  { %v1017_v56 = vpop.f32.mrb[16].mxu0 }
 0x33a   :  { %v562_v57 = vpop.f32.mrb[17].mxu0 }
 0x33b   :  { %v1018_v58 = vpop.f32.mrb[18].mxu0 }
 0x33c   :  { %v626_v59 = vpack.c.bf16 %v1018_v58, %v1017_v56  ;;  %v565_v14 = vpop.f32.mrb[19].mxu0 }
 0x33d   :  { %v625_v60 = vpack.c.bf16 %v565_v14, %v562_v57 }
 0x33f   :  { %1047 = vmatprep.mubr.bf16.mxu1 %v625_v60 }
 0x340   :  { %1048 = vmatmul.mubr.bf16.vlgmr.msra.gmra.mrb[16].mxu1 %v626_v59 }
 0x341   :  { %v1021_v15 = vpop.f32.mrb[20].mxu0 }
 0x342   :  { %v578_v18 = vpop.f32.mrb[21].mxu0 }
 0x343   :  { %v1022_v19 = vpop.f32.mrb[22].mxu0 }
 0x344   :  { %v628_v61 = vpack.c.bf16 %v1022_v19, %v1021_v15  ;;  %v581_v20 = vpop.f32.mrb[23].mxu0 }
 0x345   :  { %v627_v62 = vpack.c.bf16 %v581_v20, %v578_v18 }
 0x347   :  { %1051 = vmatprep.mubr.bf16.mxu1 %v627_v62 }
 0x348   :  { %1052 = vmatmul.mubr.bf16.gmra.mrb[20].mxu1 %v628_v61 }
 0x349   :  { %v1025_v21 = vpop.f32.mrb[24].mxu0 }
 0x34a   :  { %v594_v22 = vpop.f32.mrb[25].mxu0 }
 0x34b   :  { %v1026_v63 = vpop.f32.mrb[26].mxu0 }
 0x34c   :  { %v630_v0 = vpack.c.bf16 %v1026_v63, %v1025_v21  ;;  %v597_v1 = vpop.f32.mrb[27].mxu0 }
 0x34d   :  { %v629_v2 = vpack.c.bf16 %v597_v1, %v594_v22 }
 0x34f   :  { %1055 = vmatprep.mubr.bf16.mxu1 %v629_v2 }
 0x350   :  { %1056 = vmatmul.mubr.bf16.gmra.mrb[24].mxu1 %v630_v0 }
 0x351   :  { %v1029_v3 = vpop.f32.mrb[28].mxu0 }
 0x352   :  { %v610_v4 = vpop.f32.mrb[29].mxu0 }
 0x353   :  { %v1030_v5 = vpop.f32.mrb[30].mxu0 }
 0x354   :  { %v632_v6 = vpack.c.bf16 %v1030_v5, %v1029_v3  ;;  %v613_v7 = vpop.f32.mrb[31].mxu0 }
 0x355   :  { %v631_v8 = vpack.c.bf16 %v613_v7, %v610_v4 }
 0x357   :  { %1059 = vmatprep.mubr.bf16.mxu1 %v631_v8 }
 0x358   :  { %1060 = vmatmul.mubr.bf16.gmra.mrb[28].mxu1 %v632_v6 }
 0x413   :  { %v1049_v10 = vpop.f32.mrb[16].mxu1 }
 0x414   :  { %v747_v11 = vadd.f32 %v1049_v10, %v862_v9  ;;  %v738_v12 = vpop.f32.mrb[17].mxu1 }
 0x415   :  { %v739_v13 = vadd.f32 %v862_v9, %v738_v12  ;;  %v1050_v16 = vpop.f32.mrb[18].mxu1 }
 0x416   :  { %803 = vst [vmem:[#allocation13 + $0x10] sm:$0xff] %v747_v11  ;;  %v750_v17 = vadd.f32 %v1050_v16, %v862_v9  ;;  %v741_v23 = vpop.f32.mrb[19].mxu1 }
 0x417   :  { %801 = vst [vmem:[#allocation13] sm:$0xff] %v739_v13  ;;  %v742_v24 = vadd.f32 %v862_v9, %v741_v23 }
 0x418   :  { %804 = vst [vmem:[#allocation13 + $0x18] sm:$0xff] %v750_v17 }
 0x419   :  { %802 = vst [vmem:[#allocation13 + $0x8] sm:$0xff] %v742_v24 }
 0x41b   :  { %v1053_v25 = vpop.f32.mrb[20].mxu1 }
 0x41c   :  { %v763_v26 = vadd.f32 %v1053_v25, %v862_v9  ;;  %v754_v27 = vpop.f32.mrb[21].mxu1 }
 0x41d   :  { %v755_v28 = vadd.f32 %v862_v9, %v754_v27  ;;  %v1054_v29 = vpop.f32.mrb[22].mxu1 }
 0x41e   :  { %807 = vst [vmem:[#allocation13 + $0x30] sm:$0xff] %v763_v26  ;;  %v766_v30 = vadd.f32 %v1054_v29, %v862_v9  ;;  %v757_v31 = vpop.f32.mrb[23].mxu1 }
 0x41f   :  { %805 = vst [vmem:[#allocation13 + $0x20] sm:$0xff] %v755_v28  ;;  %v758_v32 = vadd.f32 %v862_v9, %v757_v31 }
 0x420   :  { %808 = vst [vmem:[#allocation13 + $0x38] sm:$0xff] %v766_v30 }
 0x421   :  { %806 = vst [vmem:[#allocation13 + $0x28] sm:$0xff] %v758_v32 }
 0x423   :  { %v1057_v33 = vpop.f32.mrb[24].mxu1 }
 0x424   :  { %v779_v34 = vadd.f32 %v1057_v33, %v862_v9  ;;  %v770_v35 = vpop.f32.mrb[25].mxu1 }
 0x425   :  { %v771_v36 = vadd.f32 %v862_v9, %v770_v35  ;;  %v1058_v37 = vpop.f32.mrb[26].mxu1 }
 0x426   :  { %811 = vst [vmem:[#allocation13 + $0x50] sm:$0xff] %v779_v34  ;;  %v782_v38 = vadd.f32 %v1058_v37, %v862_v9  ;;  %v773_v39 = vpop.f32.mrb[27].mxu1 }
 0x427   :  { %809 = vst [vmem:[#allocation13 + $0x40] sm:$0xff] %v771_v36  ;;  %v774_v40 = vadd.f32 %v862_v9, %v773_v39 }
 0x428   :  { %812 = vst [vmem:[#allocation13 + $0x58] sm:$0xff] %v782_v38 }
 0x429   :  { %810 = vst [vmem:[#allocation13 + $0x48] sm:$0xff] %v774_v40 }
 0x42b   :  { %v1061_v41 = vpop.f32.mrb[28].mxu1 }
 0x42c   :  { %v795_v42 = vadd.f32 %v1061_v41, %v862_v9  ;;  %v786_v43 = vpop.f32.mrb[29].mxu1 }
 0x42d   :  { %v787_v44 = vadd.f32 %v862_v9, %v786_v43  ;;  %v1062_v45 = vpop.f32.mrb[30].mxu1 }
 0x42e   :  { %815 = vst [vmem:[#allocation13 + $0x70] sm:$0xff] %v795_v42  ;;  %v798_v46 = vadd.f32 %v1062_v45, %v862_v9  ;;  %v789_v47 = vpop.f32.mrb[31].mxu1 }
 0x42f   :  { %813 = vst [vmem:[#allocation13 + $0x60] sm:$0xff] %v787_v44  ;;  %v790_v48 = vadd.f32 %v862_v9, %v789_v47 }
 0x430   :  { %816 = vst [vmem:[#allocation13 + $0x78] sm:$0xff] %v798_v46 }
 0x431   :  { %814 = vst [vmem:[#allocation13 + $0x68] sm:$0xff] %v790_v48 }
 0x432   :  { %1249 = shalt.err (!%p1246_p10)
}
 0x433   :  { %s1250_s22 = scalar_lea.hbm %s1461_s6, 2048 }
 0x434   :  { %p1251_p11 = scmp.ne.s32.totalorder %s1461_s6, %s1250_s22  ;;  %p1254_p12 = scmp.lt.u32.totalorder %s1250_s22, %s1461_s6 }
 0x436   :  { %p1256_p13 = pnand %p1254_p12, %p1251_p11 }
 0x438   :  { %1259 = shalt.err (!%p1256_p13)
}
 0x439   :  { %s1279_s29 = smov 128   ;;  %s1280_s30 = smov 8  }
 0x43a   :  { %828 = dma.vmem_to_hbm [thread:$0]  %s823_s10, 2048, %s1461_s6, [#allocation4], %s1279_s29, %s1279_s29, %s1280_s30  }
 0x43b   :  { %1268 = dma.done.wait [#allocation4], 2048  }
 0x43c   :  { %1269 = vsyncadd [#allocation4], 4294965248 }
 0x43d   :  { %832 = vsyncpa [#allocation3], 1 }
 0x43e   :  { %833 = vsyncpa [#allocation6], 1 }
 0x43f   :  { %834 = vsyncpa [#allocation9], 1 }
 0x440   :  { %835 = vsyncpa [#allocation12], 1 }
 0x441   :  { %836 = vsyncpa [#allocation4], 1 }

</bundles_post_ra>
